<compile_context>
chip_gen: v7x
topology: tpu7x:2x2x1
jax: 0.10.0
libtpu: 0.0.40
codegen_flags: <defaults>
</compile_context>

<pallas_src>
import jax
import jax.numpy as jnp
from jax.experimental import pallas as pl
from jax.experimental.pallas import tpu as pltpu

LANE = 128
SUBLANE = 8


def _cdiv(a, b):
    return -(-a // b)


def _round_up(a, b):
    return _cdiv(a, b) * b


def _fusion_kernel(x_ref, w_ref, b_ref, o_ref):
    """Fused (collapsed) 1x1 conv over a lane-dense pixel tile.

    x_ref: (Bn, C_in, T)       channels on sublanes, pixels on lanes
    w_ref: (num_colors, C_in)  collapsed weight W_eff^T
    b_ref: (num_colors, 1)     collapsed bias
    o_ref: (Bn, num_colors, T)
    """
    w = w_ref[...]
    b = b_ref[...]
    bn = x_ref.shape[0]
    # Bn is small and static -> unrolled at trace time.  With C_in=4 the MXU
    # is nearly idle, but the kernel is HBM-bound, so the degenerate matmul
    # shape costs nothing.
    for i in range(bn):
        out = jnp.dot(w, x_ref[i], preferred_element_type=jnp.float32) + b
        o_ref[i] = out.astype(o_ref.dtype)


def _choose_tiling(N, C, nc, HW, tile_hw, max_block_vmem_bytes, min_grid_steps):
    """Pick (Bn, tile, HW_pad, vmem_bytes_per_px).

    Honors: lane-dense tiles (multiple of 128), VMEM budget (sublane-padded,
    double-buffered), >=min_grid_steps grid steps when possible, and batching
    images per step when H*W is small.
    """
    HW128 = _round_up(HW, LANE)

    # VMEM footprint per pixel of one (input + output) block pair,
    # double-buffered, including sublane padding of the channel axes.
    sub_in = _round_up(C, SUBLANE)
    sub_out = _round_up(nc, SUBLANE)
    vmem_bytes_per_px = 4 * 2 * (sub_in + sub_out)   # f32, 2 pipeline buffers
    hbm_bytes_per_px = 4 * (C + nc)                  # actual HBM traffic

    # Largest lane-multiple pixel count one batch-row block may carry.
    vmem_px_cap = max(LANE, (max_block_vmem_bytes // vmem_bytes_per_px) // LANE * LANE)
    tile_target = max(LANE, min(tile_hw, vmem_px_cap) // LANE * LANE)

    if HW128 > tile_target:
        # Large images: tile the pixel axis, one image per grid step.
        Bn = 1
        n_chunks = _cdiv(HW128, tile_target)
        # Keep enough total grid steps for v7x's two TensorCores + pipelining.
        n_chunks = max(n_chunks, _cdiv(min_grid_steps, max(N, 1)))
        n_chunks = min(n_chunks, HW128 // LANE)
        tile = _round_up(_cdiv(HW128, n_chunks), LANE)
        n_chunks = _cdiv(HW128, tile)
        HW_pad = n_chunks * tile          # per-chunk padding bounded to <128 px
    else:
        # Small images: batch images into one block to amortize per-step cost.
        tile = HW128
        HW_pad = HW128
        target_step_bytes = 2 << 20       # aim for >=2 MiB HBM traffic / step
        want = _cdiv(target_step_bytes, max(1, tile * hbm_bytes_per_px))
        bn_vmem_cap = max(1, max_block_vmem_bytes // max(1, tile * vmem_bytes_per_px))
        bn_cap = max(1, min(N, want, bn_vmem_cap))
        Bn = 1
        for d in range(1, bn_cap + 1):    # largest divisor of N <= cap
            if N % d == 0:
                Bn = d
    return Bn, tile, HW_pad, vmem_bytes_per_px


def fusion_forward(x_nchw, params, *, tile_hw=131072,
                   max_block_vmem_bytes=40 << 20, min_grid_steps=4):
    """x_nchw: (N, C_in, H, W) float32. Returns (N, num_colors, H, W)."""
    wp, bp, wg, bg, wf, bf = (params["wp"], params["bp"], params["wg"],
                              params["bg"], params["wf"], params["bf"])
    N, C, H, W = x_nchw.shape
    nc = wp.shape[1]

    # --- collapse the all-linear patch/grid/fuse chain (exact only for the
    #     linear 1x1-conv stand-in heads) ---
    wf_p = wf[:nc, :]                        # half acting on patch output
    wf_g = wf[nc:, :]                        # half acting on grid output
    w_eff = wp @ wf_p + wg @ wf_g            # (C, nc)
    b_eff = bp @ wf_p + bg @ wf_g + bf       # (nc,)
    w_t = jnp.asarray(w_eff.T, jnp.float32)              # (nc, C)
    b_col = jnp.asarray(b_eff.reshape(nc, 1), jnp.float32)

    HW = H * W
    Bn, tile, HW_pad, vmem_bytes_per_px = _choose_tiling(
        N, C, nc, HW, tile_hw, max_block_vmem_bytes, min_grid_steps)
    assert tile % LANE == 0, "pixel tile must be lane-dense (multiple of 128)"
    assert HW_pad % tile == 0 and N % Bn == 0

    # Keep NCHW: only a free reshape; pad pixels only by the bounded amount.
    x3 = x_nchw.reshape(N, C, HW)
    if HW_pad != HW:
        x3 = jnp.pad(x3, ((0, 0), (0, 0), (0, HW_pad - HW)))

    grid = (N // Bn, HW_pad // tile)

    block_vmem = Bn * tile * vmem_bytes_per_px
    # Explicit scoped-VMEM limit: enough for the double-buffered blocks plus
    # headroom, above v5e's 16 MiB default, safely below v7x's 64 MiB physical.
    vmem_limit = int(min(max(block_vmem + (4 << 20), 16 << 20), 56 << 20))

    cost = pl.CostEstimate(
        flops=2 * N * HW_pad * C * nc,
        transcendentals=0,
        bytes_accessed=4 * N * HW_pad * (C + nc) + 4 * (nc * C + nc),
    )

    out3 = pl.pallas_call(
        _fusion_kernel,
        out_shape=jax.ShapeDtypeStruct((N, nc, HW_pad), jnp.float32),
        grid_spec=pltpu.PrefetchScalarGridSpec(
            num_scalar_prefetch=0,
            grid=grid,
            in_specs=[
                pl.BlockSpec((Bn, C, tile), lambda n, t: (n, 0, t)),   # x tile
                pl.BlockSpec((nc, C), lambda n, t: (0, 0)),            # W_eff^T
                pl.BlockSpec((nc, 1), lambda n, t: (0, 0)),            # b_eff
            ],
            out_specs=pl.BlockSpec((Bn, nc, tile), lambda n, t: (n, 0, t)),
        ),
        compiler_params=pltpu.CompilerParams(
            dimension_semantics=("parallel", "parallel"),
            vmem_limit_bytes=vmem_limit),
        cost_estimate=cost,
    )(x3, w_t, b_col)

    if HW_pad != HW:
        out3 = out3[:, :, :HW]
    return out3.reshape(N, nc, H, W)


def init_params(key, c_in, num_colors):
    ks = jax.random.split(key, 6)
    scale_in = 1.0 / jnp.sqrt(c_in)
    scale_fuse = 1.0 / jnp.sqrt(2 * num_colors)
    return {
        # patch head Conv2d(c_in, num_colors, 1): weight stored as (c_in, num_colors)
        "wp": jax.random.uniform(ks[0], (c_in, num_colors), jnp.float32,
                                 -scale_in, scale_in),
        "bp": jax.random.uniform(ks[1], (num_colors,), jnp.float32,
                                 -scale_in, scale_in),
        # grid head Conv2d(c_in, num_colors, 1)
        "wg": jax.random.uniform(ks[2], (c_in, num_colors), jnp.float32,
                                 -scale_in, scale_in),
        "bg": jax.random.uniform(ks[3], (num_colors,), jnp.float32,
                                 -scale_in, scale_in),
        # fuse Conv2d(2*num_colors, num_colors, 1): weight as (2*num_colors, num_colors)
        "wf": jax.random.uniform(ks[4], (2 * num_colors, num_colors), jnp.float32,
                                 -scale_fuse, scale_fuse),
        "bf": jax.random.uniform(ks[5], (num_colors,), jnp.float32,
                                 -scale_fuse, scale_fuse),
    }


def _reference(x_nchw, params):
    """Pure-JAX reference mirroring the PyTorch forward (p, g, cat, fuse)."""
    N, C, H, W = x_nchw.shape
    num_colors = params["wp"].shape[1]
    xr = jnp.transpose(x_nchw, (0, 2, 3, 1)).reshape(-1, C)
    p = xr @ params["wp"] + params["bp"]
    g = xr @ params["wg"] + params["bg"]
    cat = jnp.concatenate([p, g], axis=-1)
    out = cat @ params["wf"] + params["bf"]
    return jnp.transpose(out.reshape(N, H, W, num_colors), (0, 3, 1, 2))


if __name__ == "__main__":
    key = jax.random.PRNGKey(0)
    k_x, k_x2, k_p = jax.random.split(key, 3)

    N, C_IN, H, W = 2, 4, 16, 16
    NUM_COLORS = 10

    params = init_params(k_p, C_IN, NUM_COLORS)

    # Small-H*W path (images batched per grid step).
    x = jax.random.normal(k_x, (N, C_IN, H, W), jnp.float32)
    out = jax.block_until_ready(fusion_forward(x, params))
    ref = _reference(x, params)
    assert out.shape == (N, NUM_COLORS, H, W)
    assert jnp.allclose(out, ref, atol=1e-5, rtol=1e-5)

    # Pixel-tiled path (forces chunking + bounded padding via a small tile_hw).
    x2 = jax.random.normal(k_x2, (2, C_IN, 96, 96), jnp.float32)
    out2 = jax.block_until_ready(fusion_forward(x2, params, tile_hw=2048))
    ref2 = _reference(x2, params)
    assert out2.shape == (2, NUM_COLORS, 96, 96)
    assert jnp.allclose(out2, ref2, atol=1e-5, rtol=1e-5)

    print("KERNEL_OK")
</pallas_src>

<mosaic_0001>
module attributes {stable_mosaic.version = 11 : i64} {
  func.func @_fusion_kernel(%arg0: i32, %arg1: i32, %arg2: memref<2x4x256xf32, #tpu.memory_space<vmem>>, %arg3: memref<10x4xf32, #tpu.memory_space<vmem>>, %arg4: memref<10x1xf32, #tpu.memory_space<vmem>>, %arg5: memref<2x10x256xf32, #tpu.memory_space<vmem>>) attributes {dimension_semantics = [#tpu.dimension_semantics<parallel>, #tpu.dimension_semantics<parallel>], iteration_bounds = array<i64: 1, 1>, scalar_prefetch = 0 : i64, scratch_operands = 0 : i64, tpu.core_type = #tpu.core_type<tc>, window_params = [{transform_indices = @transform_0, window_bounds = array<i64: 2, 4, 256>}, {pipeline_mode = #tpu.pipeline_mode<synchronous>, transform_indices = @transform_1, window_bounds = array<i64: 10, 4>}, {pipeline_mode = #tpu.pipeline_mode<synchronous>, transform_indices = @transform_2, window_bounds = array<i64: 10, 1>}, {transform_indices = @transform_3, window_bounds = array<i64: 2, 10, 256>}]} {
    %c0 = arith.constant 0 : index
    %c0_0 = arith.constant 0 : index
    %0 = vector.load %arg3[%c0, %c0_0] : memref<10x4xf32, #tpu.memory_space<vmem>>, vector<10x4xf32>
    %c0_1 = arith.constant 0 : index
    %c0_2 = arith.constant 0 : index
    %1 = vector.load %arg4[%c0_1, %c0_2] : memref<10x1xf32, #tpu.memory_space<vmem>>, vector<10x1xf32>
    %c0_3 = arith.constant 0 : index
    %c0_4 = arith.constant 0 : index
    %c0_5 = arith.constant 0 : index
    %2 = vector.load %arg2[%c0_3, %c0_4, %c0_5] : memref<2x4x256xf32, #tpu.memory_space<vmem>>, vector<1x4x256xf32>
    %3 = vector.shape_cast %2 : vector<1x4x256xf32> to vector<4x256xf32>
    %cst = arith.constant dense<0.000000e+00> : vector<10x256xf32>
    %4 = tpu.matmul %0, %3, %cst {dimension_numbers = #tpu.dot_dimension_numbers<[1], [0], [0], [1], [0, 0, 1, 1], [], []>} : vector<10x4xf32>, vector<4x256xf32>, vector<10x256xf32> -> vector<10x256xf32>
    %5 = vector.broadcast %1 : vector<10x1xf32> to vector<10x256xf32>
    %6 = arith.addf %4, %5 : vector<10x256xf32>
    %c0_6 = arith.constant 0 : index
    %c0_7 = arith.constant 0 : index
    %c0_8 = arith.constant 0 : index
    %7 = vector.load %arg5[%c0_6, %c0_7, %c0_8] : memref<2x10x256xf32, #tpu.memory_space<vmem>>, vector<1x10x256xf32>
    %8 = vector.shape_cast %7 : vector<1x10x256xf32> to vector<10x256xf32>
    %9 = vector.shape_cast %6 : vector<10x256xf32> to vector<1x10x256xf32>
    tpu.vector_store %arg5[%c0_6, %c0_7, %c0_8], %9 {strides = array<i32>} : memref<2x10x256xf32, #tpu.memory_space<vmem>>, vector<1x10x256xf32>,
    %c1 = arith.constant 1 : index
    %c0_9 = arith.constant 0 : index
    %c0_10 = arith.constant 0 : index
    %10 = vector.load %arg2[%c1, %c0_9, %c0_10] : memref<2x4x256xf32, #tpu.memory_space<vmem>>, vector<1x4x256xf32>
    %11 = vector.shape_cast %10 : vector<1x4x256xf32> to vector<4x256xf32>
    %cst_11 = arith.constant dense<0.000000e+00> : vector<10x256xf32>
    %12 = tpu.matmul %0, %11, %cst_11 {dimension_numbers = #tpu.dot_dimension_numbers<[1], [0], [0], [1], [0, 0, 1, 1], [], []>} : vector<10x4xf32>, vector<4x256xf32>, vector<10x256xf32> -> vector<10x256xf32>
    %13 = vector.broadcast %1 : vector<10x1xf32> to vector<10x256xf32>
    %14 = arith.addf %12, %13 : vector<10x256xf32>
    %c1_12 = arith.constant 1 : index
    %c0_13 = arith.constant 0 : index
    %c0_14 = arith.constant 0 : index
    %15 = vector.load %arg5[%c1_12, %c0_13, %c0_14] : memref<2x10x256xf32, #tpu.memory_space<vmem>>, vector<1x10x256xf32>
    %16 = vector.shape_cast %15 : vector<1x10x256xf32> to vector<10x256xf32>
    %17 = vector.shape_cast %14 : vector<10x256xf32> to vector<1x10x256xf32>
    tpu.vector_store %arg5[%c1_12, %c0_13, %c0_14], %17 {strides = array<i32>} : memref<2x10x256xf32, #tpu.memory_space<vmem>>, vector<1x10x256xf32>,
    return
  }
  func.func @transform_0(%arg0: i32, %arg1: i32) -> (i32, i32, i32) {
    %c0_i32 = arith.constant 0 : i32
    %c0_i32_0 = arith.constant 0 : i32
    return %arg0, %c0_i32, %arg1 : i32, i32, i32
  }
  func.func @transform_1(%arg0: i32, %arg1: i32) -> (i32, i32) {
    %c0_i32 = arith.constant 0 : i32
    %c0_i32_0 = arith.constant 0 : i32
    %c0_i32_1 = arith.constant 0 : i32
    return %c0_i32, %c0_i32_0 : i32, i32
  }
  func.func @transform_2(%arg0: i32, %arg1: i32) -> (i32, i32) {
    %c0_i32 = arith.constant 0 : i32
    %c0_i32_0 = arith.constant 0 : i32
    %c0_i32_1 = arith.constant 0 : i32
    return %c0_i32, %c0_i32_0 : i32, i32
  }
  func.func @transform_3(%arg0: i32, %arg1: i32) -> (i32, i32, i32) {
    %c0_i32 = arith.constant 0 : i32
    %c0_i32_0 = arith.constant 0 : i32
    return %arg0, %c0_i32, %arg1 : i32, i32, i32
  }
}

</mosaic_0001>

<bundles_post_ra>
// kernel: tpu_custom_call.1
= control target key start
LH: loop header
LB: loop body
LE: loop exit
PB: predicated region body
PF: predicated region fallthrough
CT: control target
= control target key end

     0   :  { %vm38_vm0 = vcmask 1043456   ;;  %v236_v2 = vmov 0.0   ;;  %v237_v5 = vmov 0   ;;  %vm31_vm1 = vcmask 31744   ;;  %s304_s0 = inlined_call_operand.vmem [shape: f32[2,4,256], index: 0, kind: input, shape index: {}]   ;;  %s305_s1 = inlined_call_operand.vmem [shape: f32[10,4], index: 1, kind: input, shape index: {}]   ;;  %s306_s2 = inlined_call_operand.vmem [shape: f32[10,1], index: 2, kind: input, shape index: {}]   ;;  %s307_s3 = inlined_call_operand.vmem [shape: f32[2,10,256], index: 3, kind: output, shape index: {}]  }
   0x1   :  { %v18_v0 = vld [vmem:[%s304_s0] sm:$0xff]  ;;  %v222_v1 = vld [vmem:[%s304_s0 + $0x8] sm:$0xff]  ;;  %107 = vmatprep.mubr.f32.mxu0 %v236_v2  ;;  %196 = vmatprep.mubr.f32.mxu1 %v236_v2 }
   0x2   :  { %v30_v3 = vcombine.high %v18_v0, %v18_v0  ;;  %v127_v4 = vcombine.high %v222_v1, %v222_v1  ;;  %233 = vset.pattern.permute.xlu0 %v237_v5  ;;  %v16_v6 = vld [vmem:[%s306_s2] sm:$0xff]  ;;  %v17_v8 = vld [vmem:[%s306_s2 + $0x8] sm:$0x3] }
   0x3   :  { %v14_v7 = vld [vmem:[%s305_s1] sm:$0xff]  ;;  %21 = vperm.xlu0 %233, %v16_v6   ;;  %v15_v9 = vld [vmem:[%s305_s1 + $0x8] sm:$0x3] }
   0x4   :  { %218 = vmatprep.subr.msk.mxu0 %vm38_vm0, %v30_v3  ;;  %223 = vmatprep.subr.msk.mxu1 %vm38_vm0, %v127_v4 }
   0x5   :  { %219 = vmatpush1.msk.msra.mxu0 %vm38_vm0, %v18_v0  ;;  %224 = vmatpush1.msk.msra.mxu1 %vm38_vm0, %v222_v1 }
   0x6   :  { %220 = vmatmul.mubr.msk.f32.vlgmr.msra.gmra.mrb[0].mxu0 %vm31_vm1, %v14_v7  ;;  %225 = vmatmul.mubr.msk.f32.vlgmr.msra.gmra.mrb[0].mxu1 %vm31_vm1, %v14_v7 }
   0x7   :  { %113 = vmatprep.mubr.f32.mxu0 %v236_v2  ;;  %202 = vmatprep.mubr.f32.mxu1 %v236_v2 }
   0x8   :  { %26 = vperm.xlu0 %233, %v17_v8  }
   0xa   :  { %221 = vmatmul.mubr.msk.f32.gmra.mrb[2].mxu0 %vm31_vm1, %v15_v9  ;;  %226 = vmatmul.mubr.msk.f32.gmra.mrb[2].mxu1 %vm31_vm1, %v15_v9 }
  0x82   :  { %v22_v10 = vpop.permute.xlu0 %21 }
  0x87   :  { %v27_v19 = vpop.permute.xlu0 %26 }
  0xd9   :  { %v109_v11 = vpop.f32.mrb[0].mxu0  ;;  %v198_v12 = vpop.f32.mrb[0].mxu1 }
  0xda   :  { %v110_v13 = vadd.f32 %v109_v11, %v22_v10  ;;  %v199_v14 = vadd.f32 %v198_v12, %v22_v10  ;;  %v111_v15 = vpop.f32.mrb[1].mxu0  ;;  %v200_v16 = vpop.f32.mrb[1].mxu1 }
  0xdb   :  { %v112_v17 = vadd.f32 %v111_v15, %v22_v10  ;;  %v201_v18 = vadd.f32 %v200_v16, %v22_v10 }
  0xdc   :  { %120 = vst [vmem:[%s307_s3] sm:$0xff] %v110_v13  ;;  %227 = vst [vmem:[%s307_s3 + $0x20] sm:$0xff] %v199_v14 }
  0xdd   :  { %121 = vst [vmem:[%s307_s3 + $0x8] sm:$0xff] %v112_v17  ;;  %228 = vst [vmem:[%s307_s3 + $0x28] sm:$0xff] %v201_v18  ;;  %v115_v20 = vpop.f32.mrb[2].mxu0  ;;  %v204_v21 = vpop.f32.mrb[2].mxu1 }
  0xde   :  { %v116_v22 = vadd.f32 %v115_v20, %v27_v19  ;;  %v205_v23 = vadd.f32 %v204_v21, %v27_v19  ;;  %v117_v24 = vpop.f32.mrb[3].mxu0  ;;  %v206_v25 = vpop.f32.mrb[3].mxu1 }
  0xdf   :  { %v118_v26 = vadd.f32 %v117_v24, %v27_v19  ;;  %v207_v27 = vadd.f32 %v206_v25, %v27_v19 }
  0xe0   :  { %122 = vst [vmem:[%s307_s3 + $0x10] sm:$0x3] %v116_v22  ;;  %229 = vst [vmem:[%s307_s3 + $0x30] sm:$0x3] %v205_v23 }
  0xe1   :  { %123 = vst [vmem:[%s307_s3 + $0x18] sm:$0x3] %v118_v26  ;;  %230 = vst [vmem:[%s307_s3 + $0x38] sm:$0x3] %v207_v27 }

</bundles_post_ra>
